<compile_context>
chip_gen: v7x
topology: tpu7x:2x2x1
jax: 0.10.0
libtpu: 0.0.40
codegen_flags: <defaults>
</compile_context>

<pallas_src>
import functools

import jax
import jax.numpy as jnp
from jax.experimental import pallas as pl
from jax.experimental.pallas import tpu as pltpu


def _round_up(x, m):
    return (x + m - 1) // m * m


def _pick_tile(dim, target, align):
    """Largest multiple of `align` that is <= target and divides `dim`; else `dim`."""
    if dim <= target:
        return dim
    t = (target // align) * align
    while t >= align:
        if dim % t == 0:
            return t
        t -= align
    return dim


# ---------------------------------------------------------------------------
# Stages 1 & 3: streamed tiled matmul (+ bias row) on the MXU.
# ---------------------------------------------------------------------------
def _matmul_bias_kernel(x_ref, w_ref, b_ref, o_ref, acc_ref):
    k = pl.program_id(2)

    @pl.when(k == 0)
    def _():
        acc_ref[...] = jnp.zeros_like(acc_ref)

    acc_ref[...] += jnp.dot(x_ref[...], w_ref[...],
                            preferred_element_type=jnp.float32)

    @pl.when(k == pl.num_programs(2) - 1)
    def _():
        o_ref[...] = (acc_ref[...] + b_ref[...]).astype(o_ref.dtype)


def _matmul_bias(x, w, bias, out_dtype, *, tm=256, tn=512, tk=512):
    """x: (M, K) bf16, w: (K, NO) bf16, bias: (1, NO) f32 -> (M, NO) out_dtype."""
    M, K = x.shape
    K2, NO = w.shape
    assert K == K2
    tm = _pick_tile(M, tm, 8)
    tn = _pick_tile(NO, tn, 128)
    tk = _pick_tile(K, tk, 128)
    grid = (M // tm, NO // tn, K // tk)
    return pl.pallas_call(
        _matmul_bias_kernel,
        out_shape=jax.ShapeDtypeStruct((M, NO), out_dtype),
        grid=grid,
        in_specs=[
            pl.BlockSpec((tm, tk), lambda i, j, k: (i, k)),
            pl.BlockSpec((tk, tn), lambda i, j, k: (k, j)),
            pl.BlockSpec((1, tn), lambda i, j, k: (0, j)),
        ],
        out_specs=pl.BlockSpec((tm, tn), lambda i, j, k: (i, j)),
        scratch_shapes=[pltpu.VMEM((tm, tn), jnp.float32)],
        compiler_params=pltpu.CompilerParams(
            dimension_semantics=("parallel", "parallel", "arbitrary")),
    )(x, w, bias)


# ---------------------------------------------------------------------------
# Stage 2: attention core, one grid step per (batch, head, query block).
# ---------------------------------------------------------------------------
def _attn_kernel(q_ref, k_ref, v_ref, o_ref, *, n_valid, n_padded):
    # TODO(synk): pair two heads per grid step when head_dim < 128 so q/k/v
    # operands are full-lane (currently half-lane for D=64 models).
    q = q_ref[0, 0]                                   # (TQ, D) bf16, pre-scaled
    k = k_ref[0, 0]                                   # (NP, D) bf16
    v = v_ref[0, 0]                                   # (NP, D) bf16

    # logits on the MXU with f32 accumulation
    s = jax.lax.dot_general(q, k, dimension_numbers=(((1,), (1,)), ((), ())),
                            preferred_element_type=jnp.float32)   # (TQ, NP) f32
    if n_valid != n_padded:                           # static branch
        key_id = jax.lax.broadcasted_iota(jnp.int32, s.shape, 1)
        s = jnp.where(key_id < n_valid, s, -1e30)     # mask padded keys

    # numerically stable softmax in f32; defer normalization to the small ctx
    m = jnp.max(s, axis=-1, keepdims=True)
    p = jnp.exp(s - m)
    denom = jnp.sum(p, axis=-1, keepdims=True)
    ctx = jnp.dot(p.astype(jnp.bfloat16), v,
                  preferred_element_type=jnp.float32)             # (TQ, D) f32
    ctx = ctx * pl.reciprocal(denom, approx=True)                 # EUP slot
    o_ref[0, 0] = ctx.astype(o_ref.dtype)


def _attention_core(q, k, v, *, n_valid):
    B, H, NP, D = q.shape
    tq = _pick_tile(NP, 256, 8)
    kernel = functools.partial(_attn_kernel, n_valid=n_valid, n_padded=NP)
    return pl.pallas_call(
        kernel,
        out_shape=jax.ShapeDtypeStruct((B, H, NP, D), jnp.bfloat16),
        grid=(B, H, NP // tq),
        in_specs=[
            pl.BlockSpec((1, 1, tq, D), lambda b, h, i: (b, h, i, 0)),
            pl.BlockSpec((1, 1, NP, D), lambda b, h, i: (b, h, 0, 0)),
            pl.BlockSpec((1, 1, NP, D), lambda b, h, i: (b, h, 0, 0)),
        ],
        out_specs=pl.BlockSpec((1, 1, tq, D), lambda b, h, i: (b, h, i, 0)),
        compiler_params=pltpu.CompilerParams(
            dimension_semantics=("parallel", "parallel", "parallel")),
    )(q, k, v)


# ---------------------------------------------------------------------------
# Wrapper: full Attention._naive_attn forward.
# ---------------------------------------------------------------------------
def attention_forward(x, wqkv, wproj, bproj, *, num_heads):
    """x: (B, N, C); wqkv: (3C, C) (PyTorch Linear layout); wproj: (C, C); bproj: (C,)."""
    B, N, C = x.shape
    assert C % num_heads == 0
    D = C // num_heads
    scale = D ** (-0.5)

    # Token-dim padding: lane-friendly (128) at production N, sublane (8) at tiny N.
    NP = _round_up(N, 128) if N >= 128 else _round_up(N, 8)

    # One-time weight prep: transpose to (in, out); fold the attention scale into
    # the q output columns.  NOTE: only valid because qkv_bias=False and
    # qk_normalization=False (module defaults).
    col_scale = jnp.concatenate(
        [jnp.full((C,), scale, jnp.float32), jnp.ones((2 * C,), jnp.float32)])
    wqkv_t = (jnp.transpose(wqkv).astype(jnp.float32) * col_scale[None, :]
              ).astype(jnp.bfloat16)                        # (C, 3C)
    wproj_t = jnp.transpose(wproj).astype(jnp.bfloat16)     # (C, C)
    bproj2 = bproj.reshape(1, C).astype(jnp.float32)
    zero_bias = jnp.zeros((1, 3 * C), jnp.float32)

    # bf16 activations: halves x/out HBM traffic; MXU operands are bf16 anyway.
    x_p = x
    if NP != N:
        x_p = jnp.pad(x, ((0, 0), (0, NP - N), (0, 0)))
    x2d = x_p.reshape(B * NP, C).astype(jnp.bfloat16)

    # Stage 1: fused qkv projection.
    qkv = _matmul_bias(x2d, wqkv_t, zero_bias, jnp.bfloat16)            # (B*NP, 3C)

    # Layout plumbing (XLA): (B*NP, 3C) -> (3, B, H, NP, D).
    qkv = qkv.reshape(B, NP, 3, num_heads, D).transpose(2, 0, 3, 1, 4)
    q, k, v = qkv[0], qkv[1], qkv[2]

    # Stage 2: attention core.
    ctx = _attention_core(q, k, v, n_valid=N)                           # (B, H, NP, D)

    # Layout plumbing (XLA): (B, H, NP, D) -> (B*NP, C).
    ctx2d = ctx.transpose(0, 2, 1, 3).reshape(B * NP, C)

    # Stage 3: output projection with bias (single deep-K contraction).
    out = _matmul_bias(ctx2d, wproj_t, bproj2, x.dtype)                 # (B*NP, C)
    return out.reshape(B, NP, C)[:, :N, :]


def _reference(x, wqkv, wproj, bproj, num_heads):
    """Pure-JAX mirror of Attention._naive_attn (dropout = identity)."""
    B, N, C = x.shape
    D = C // num_heads
    scale = D ** (-0.5)
    qkv = x @ wqkv.T                                             # (B, N, 3C)
    qkv = qkv.reshape(B, N, 3, num_heads, D).transpose(2, 0, 3, 1, 4)
    q, k, v = qkv[0], qkv[1], qkv[2]                             # (B, H, N, D)
    attn = jnp.einsum('bhnd,bhmd->bhnm', q * scale, k)
    attn = jax.nn.softmax(attn, axis=-1)
    ctx = jnp.einsum('bhnm,bhmd->bhnd', attn, v)
    ctx = ctx.transpose(0, 2, 1, 3).reshape(B, N, C)
    return ctx @ wproj.T + bproj


if __name__ == "__main__":
    # Small shapes consistent with the module: B=2 batch, N=9 tokens (exercises
    # the pad-to-16 + key-masking path), C=32 channels, 4 heads -> head_dim=8.
    B, N, C, H = 2, 9, 32, 4

    key = jax.random.PRNGKey(0)
    k1, k2, k3, k4 = jax.random.split(key, 4)
    x = jax.random.normal(k1, (B, N, C), dtype=jnp.float32)
    # Deterministic synthetic parameters, PyTorch Linear layout (out, in).
    wqkv = jax.random.normal(k2, (3 * C, C), dtype=jnp.float32) * 0.05   # qkv_bias=False
    wproj = jax.random.normal(k3, (C, C), dtype=jnp.float32) * 0.05
    bproj = jax.random.normal(k4, (C,), dtype=jnp.float32) * 0.05

    out = attention_forward(x, wqkv, wproj, bproj, num_heads=H)
    out = jax.block_until_ready(out)

    ref = _reference(x, wqkv, wproj, bproj, H)
    assert out.shape == (B, N, C)
    # bf16 MXU operands + approx reciprocal -> slightly looser tolerance.
    err = jnp.max(jnp.abs(out - ref))
    assert jnp.allclose(out, ref, atol=2e-2, rtol=2e-2), f"max abs diff {err}"
    print("KERNEL_OK")
</pallas_src>

<mosaic_0001>
module attributes {stable_mosaic.version = 11 : i64} {
  func.func @_matmul_bias_kernel(%arg0: i32, %arg1: i32, %arg2: i32, %arg3: memref<32x32xbf16, #tpu.memory_space<vmem>>, %arg4: memref<32x96xbf16, #tpu.memory_space<vmem>>, %arg5: memref<1x96xf32, #tpu.memory_space<vmem>>, %arg6: memref<32x96xbf16, #tpu.memory_space<vmem>>, %arg7: memref<32x96xf32, #tpu.memory_space<vmem>>) attributes {dimension_semantics = [#tpu.dimension_semantics<parallel>, #tpu.dimension_semantics<parallel>, #tpu.dimension_semantics<arbitrary>], iteration_bounds = array<i64: 1, 1, 1>, scalar_prefetch = 0 : i64, scratch_operands = 1 : i64, tpu.core_type = #tpu.core_type<tc>, window_params = [{transform_indices = @transform_0, window_bounds = array<i64: 32, 32>}, {transform_indices = @transform_1, window_bounds = array<i64: 32, 96>}, {transform_indices = @transform_2, window_bounds = array<i64: 1, 96>}, {transform_indices = @transform_3, window_bounds = array<i64: 32, 96>}]} {
    %c0_i32 = arith.constant 0 : i32
    %0 = arith.cmpi eq, %arg2, %c0_i32 : i32
    %1 = arith.extui %0 : i1 to i32
    %c0_i32_0 = arith.constant 0 : i32
    %2 = arith.cmpi ne, %1, %c0_i32_0 : i32
    scf.if %2 {
      %cst_10 = arith.constant 0.000000e+00 : f32
      %12 = vector.broadcast %cst_10 : f32 to vector<32x96xf32>
      %c0_11 = arith.constant 0 : index
      %c0_12 = arith.constant 0 : index
      %13 = vector.load %arg7[%c0_11, %c0_12] : memref<32x96xf32, #tpu.memory_space<vmem>>, vector<32x96xf32>
      tpu.vector_store %arg7[%c0_11, %c0_12], %12 {strides = array<i32>} : memref<32x96xf32, #tpu.memory_space<vmem>>, vector<32x96xf32>,
    } else {
    }
    %c0 = arith.constant 0 : index
    %c0_1 = arith.constant 0 : index
    %3 = vector.load %arg7[%c0, %c0_1] : memref<32x96xf32, #tpu.memory_space<vmem>>, vector<32x96xf32>
    %c0_2 = arith.constant 0 : index
    %c0_3 = arith.constant 0 : index
    %4 = vector.load %arg3[%c0_2, %c0_3] : memref<32x32xbf16, #tpu.memory_space<vmem>>, vector<32x32xbf16>
    %c0_4 = arith.constant 0 : index
    %c0_5 = arith.constant 0 : index
    %5 = vector.load %arg4[%c0_4, %c0_5] : memref<32x96xbf16, #tpu.memory_space<vmem>>, vector<32x96xbf16>
    %cst = arith.constant dense<0.000000e+00> : vector<32x96xf32>
    %6 = tpu.matmul %4, %5, %cst {dimension_numbers = #tpu.dot_dimension_numbers<[1], [0], [0], [1], [0, 0, 1, 1], [], []>} : vector<32x32xbf16>, vector<32x96xbf16>, vector<32x96xf32> -> vector<32x96xf32>
    %7 = arith.addf %3, %6 : vector<32x96xf32>
    %c0_6 = arith.constant 0 : index
    %c0_7 = arith.constant 0 : index
    %8 = vector.load %arg7[%c0_6, %c0_7] : memref<32x96xf32, #tpu.memory_space<vmem>>, vector<32x96xf32>
    tpu.vector_store %arg7[%c0_6, %c0_7], %7 {strides = array<i32>} : memref<32x96xf32, #tpu.memory_space<vmem>>, vector<32x96xf32>,
    %c0_i32_8 = arith.constant 0 : i32
    %9 = arith.cmpi eq, %arg2, %c0_i32_8 : i32
    %10 = arith.extui %9 : i1 to i32
    %c0_i32_9 = arith.constant 0 : i32
    %11 = arith.cmpi ne, %10, %c0_i32_9 : i32
    scf.if %11 {
      %c0_10 = arith.constant 0 : index
      %c0_11 = arith.constant 0 : index
      %12 = vector.load %arg7[%c0_10, %c0_11] : memref<32x96xf32, #tpu.memory_space<vmem>>, vector<32x96xf32>
      %c0_12 = arith.constant 0 : index
      %c0_13 = arith.constant 0 : index
      %13 = vector.load %arg5[%c0_12, %c0_13] : memref<1x96xf32, #tpu.memory_space<vmem>>, vector<1x96xf32>
      %14 = vector.broadcast %13 : vector<1x96xf32> to vector<32x96xf32>
      %15 = arith.addf %12, %14 : vector<32x96xf32>
      %16 = arith.truncf %15 : vector<32x96xf32> to vector<32x96xbf16>
      %c0_14 = arith.constant 0 : index
      %c0_15 = arith.constant 0 : index
      %17 = vector.load %arg6[%c0_14, %c0_15] : memref<32x96xbf16, #tpu.memory_space<vmem>>, vector<32x96xbf16>
      tpu.vector_store %arg6[%c0_14, %c0_15], %16 {strides = array<i32>} : memref<32x96xbf16, #tpu.memory_space<vmem>>, vector<32x96xbf16>,
    } else {
    }
    return
  }
  func.func @transform_0(%arg0: i32, %arg1: i32, %arg2: i32) -> (i32, i32) {
    %c0_i32 = arith.constant 0 : i32
    return %arg0, %arg2 : i32, i32
  }
  func.func @transform_1(%arg0: i32, %arg1: i32, %arg2: i32) -> (i32, i32) {
    %c0_i32 = arith.constant 0 : i32
    return %arg2, %arg1 : i32, i32
  }
  func.func @transform_2(%arg0: i32, %arg1: i32, %arg2: i32) -> (i32, i32) {
    %c0_i32 = arith.constant 0 : i32
    %c0_i32_0 = arith.constant 0 : i32
    return %c0_i32, %arg1 : i32, i32
  }
  func.func @transform_3(%arg0: i32, %arg1: i32, %arg2: i32) -> (i32, i32) {
    %c0_i32 = arith.constant 0 : i32
    return %arg0, %arg1 : i32, i32
  }
}

</mosaic_0001>

<bundles_post_ra>
// kernel: tpu_custom_call.1
= control target key start
LH: loop header
LB: loop body
LE: loop exit
PB: predicated region body
PF: predicated region fallthrough
CT: control target
= control target key end

     0   :  { %8 = vsyncpa [#allocation4], 0  ;;  %s400_s0 = inlined_call_operand.hbm [shape: bf16[32,32], index: 0, kind: input, shape index: {}]   ;;  %s401_s1 = inlined_call_operand.hbm [shape: bf16[32,96], index: 1, kind: input, shape index: {}]   ;;  %s402_s2 = inlined_call_operand.vmem [shape: f32[1,96], index: 2, kind: input, shape index: {}]   ;;  %s403_s3 = inlined_call_operand.hbm [shape: bf16[32,96], index: 3, kind: output, shape index: {}]  }
   0x1   :  { %9 = vsyncpa [#allocation7], 0 }
   0x2   :  { %10 = vsyncpa [#allocation5], 0  ;;  %s318_s12 = smov [#allocation3]   ;;  %s246_s16 = scalar_lea.hbm %s400_s0, 256 }
   0x3   :  { %s16_s13 = sshll.u32 %s318_s12, 4  ;;  %p247_p0 = scmp.ne.s32.totalorder %s400_s0, %s246_s16  ;;  %s17_s13 = int_to_ptr.vmem [resolvable:$true] %s16_s13 }
   0x4   :  { %p250_p1 = scmp.lt.u32.totalorder %s246_s16, %s400_s0 }
   0x6   :  { %p252_p2 = pnand %p250_p1, %p247_p0 }
   0x8   :  { %255 = shalt.err (!%p252_p2)
}
   0x9   :  { %s256_s21 = scalar_lea.vmem %s17_s13, 256  ;;  %p261_p4 = scmp.lt.s32.totalorder %s17_s13, %s17_s13 }
   0xa   :  { %p257_p3 = scmp.ne.s32.totalorder %s17_s13, %s256_s21  ;;  %p262_p5 = scmp.lt.s32.totalorder %s256_s21, %s256_s21 }
   0xc   :  { %p263_p6 = por %p262_p5, %p261_p4 }
   0xe   :  { %p264_p7 = pnand %p263_p6, %p257_p3 }
  0x10   :  { %267 = shalt.err (!%p264_p7)
}
  0x11   :  { %s319_s22 = smov 64   ;;  %s320_s23 = smov 4  }
  0x12   :  { %22 = dma.hbm_to_vmem [thread:$0]  %s400_s0, 256, %s17_s13, [#allocation4], %s319_s22, %s319_s22, %s320_s23  }
  0x13   :  { %s321_s26 = smov [#allocation6]   ;;  %s268_s30 = scalar_lea.hbm %s401_s1, 256 }
  0x14   :  { %s28_s27 = sshll.u32 %s321_s26, 4  ;;  %p269_p8 = scmp.ne.s32.totalorder %s401_s1, %s268_s30  ;;  %s29_s27 = int_to_ptr.vmem [resolvable:$true] %s28_s27 }
  0x15   :  { %p272_p9 = scmp.lt.u32.totalorder %s268_s30, %s401_s1 }
  0x17   :  { %p274_p10 = pnand %p272_p9, %p269_p8 }
  0x19   :  { %277 = shalt.err (!%p274_p10)
}
  0x1a   :  { %s278_s8 = scalar_lea.vmem %s29_s27, 256  ;;  %p283_p12 = scmp.lt.s32.totalorder %s29_s27, %s29_s27 }
  0x1b   :  { %p279_p11 = scmp.ne.s32.totalorder %s29_s27, %s278_s8  ;;  %p284_p13 = scmp.lt.s32.totalorder %s278_s8, %s278_s8 }
  0x1d   :  { %p285_p0 = por %p284_p13, %p283_p12 }
  0x1f   :  { %p286_p1 = pnand %p285_p0, %p279_p11 }
  0x21   :  { %289 = shalt.err (!%p286_p1)
}
  0x22   :  { %34 = dma.hbm_to_vmem [thread:$0]  %s401_s1, 256, %s29_s27, [#allocation7], %s319_s22, %s319_s22, %s320_s23  }
  0x23   :  { %312 = dma.done.wait [#allocation4], 256  }
  0x24   :  { %313 = vsyncadd [#allocation4], 4294967040 }
  0x25   :  { %314 = dma.done.wait [#allocation7], 256  }
  0x26   :  { %315 = vsyncadd [#allocation7], 4294967040  ;;  %vm48_vm0 = vcmask 785408   ;;  %v322_v0 = vmov 0.0   ;;  %v242_v1 = vld [vmem:[#allocation6] sm:$0xff]   ;;  %v243_v2 = vld [vmem:[#allocation6 + $0x8] sm:$0xff]  }
  0x27   :  { %51 = vst.msk [vmem:[#allocation2 + $0x10] sm:$0xff] %vm48_vm0, %v322_v0  ;;  %49 = vst.msk [vmem:[#allocation2] sm:$0xff] %vm48_vm0, %v322_v0  ;;  %vm87_vm1 = vcmask 261120   ;;  %228 = vmatprep.subr.bf16.mxu0 %v242_v1  ;;  %v244_v3 = vld [vmem:[#allocation3] sm:$0xff]   ;;  %v245_v4 = vld [vmem:[#allocation3 + $0x8] sm:$0xff]   ;;  %vm186_vm2 = vcmask 781312  }
  0x28   :  { %50 = vst.msk [vmem:[#allocation2 + $0x8] sm:$0xff] %vm48_vm0, %v322_v0  ;;  %52 = vst.msk [vmem:[#allocation2 + $0x18] sm:$0xff] %vm48_vm0, %v322_v0  ;;  %229 = vmatpush3.bf16.msra.mxu0 %v242_v1  ;;  %232 = vmatprep.mubr.msk.bf16.mxu0 %vm87_vm1, %v244_v3  ;;  %v215_v17 = vld [vmem:[%s402_s2] ss:$0 sm:$0xff]  ;;  %s323_s11 = smov [#allocation8]  }
  0x29   :  { %230 = vmatprep.subr.bf16.mxu0 %v243_v2  ;;  %s196_s12 = sshll.u32 %s323_s11, 4  ;;  %s197_s12 = int_to_ptr.vmem [resolvable:$true] %s196_s12 }
  0x2a   :  { %s290_s2 = scalar_lea.vmem %s197_s12, 256  ;;  %p295_p3 = scmp.lt.s32.totalorder %s197_s12, %s197_s12 }
  0x2b   :  { %p291_p2 = scmp.ne.s32.totalorder %s197_s12, %s290_s2  ;;  %p296_p4 = scmp.lt.s32.totalorder %s290_s2, %s290_s2 }
  0x2c   :  { %231 = vmatpush3.bf16.msra.mxu0 %v243_v2 }
  0x2d   :  { %p297_p5 = por %p296_p4, %p295_p3 }
  0x2e   :  { %v55_v5 = vld [vmem:[#allocation2 + $0x10] sm:$0xff]  ;;  %v53_v6 = vld [vmem:[#allocation2] sm:$0xff] }
  0x2f   :  { %233 = vmatmul.mubr.msk.bf16.vlgmr.msra.gmra.mrb[0].mxu0 %vm87_vm1, %v245_v4  ;;  %v56_v8 = vld [vmem:[#allocation2 + $0x18] sm:$0xff]  ;;  %v54_v11 = vld [vmem:[#allocation2 + $0x8] sm:$0xff]  ;;  %p298_p6 = pnand %p297_p5, %p291_p2 }
 0x102   :  { %v234_v7 = vpop.f32.mrb[0].mxu0 }
 0x103   :  { %v145_v9 = vadd.f32 %v234_v7, %v55_v5  ;;  %v128_v10 = vpop.f32.mrb[1].mxu0 }
 0x104   :  { %v143_v12 = vadd.f32 %v128_v10, %v53_v6  ;;  %v235_v13 = vpop.f32.mrb[2].mxu0 }
 0x105   :  { %150 = vst.msk [vmem:[#allocation2 + $0x10] sm:$0xff] %vm48_vm0, %v145_v9  ;;  %v146_v14 = vadd.f32 %v235_v13, %v56_v8  ;;  %v131_v15 = vpop.f32.mrb[3].mxu0 }
 0x106   :  { %148 = vst.msk [vmem:[#allocation2] sm:$0xff] %vm48_vm0, %v143_v12  ;;  %v144_v16 = vadd.f32 %v131_v15, %v54_v11 }
 0x107   :  { %151 = vst.msk [vmem:[#allocation2 + $0x18] sm:$0xff] %vm48_vm0, %v146_v14 }
 0x108   :  { %149 = vst.msk [vmem:[#allocation2 + $0x8] sm:$0xff] %vm48_vm0, %v144_v16 }
 0x10c   :  { %v157_v18 = vld [vmem:[#allocation2 + $0x10] sm:$0xff] }
 0x10d   :  { %v155_v19 = vld [vmem:[#allocation2] sm:$0xff]  ;;  %v168_v20 = vadd.f32 %v215_v17, %v157_v18 }
 0x10e   :  { %v158_v21 = vld [vmem:[#allocation2 + $0x18] sm:$0xff]  ;;  %v166_v22 = vadd.f32 %v215_v17, %v155_v19 }
 0x10f   :  { %v156_v23 = vld [vmem:[#allocation2 + $0x8] sm:$0xff]  ;;  %v169_v24 = vadd.f32 %v215_v17, %v158_v21  ;;  %v222_v25 = vpack.c.bf16 %v168_v20, %v168_v20 }
 0x110   :  { %v167_v26 = vadd.f32 %v215_v17, %v156_v23  ;;  %v220_v27 = vpack.c.bf16 %v166_v22, %v166_v22 }
 0x111   :  { %v223_v28 = vpack.c.bf16 %v169_v24, %v169_v24  ;;  %189 = vst.msk [vmem:[#allocation8 + $0x8] sm:$0xf] %vm186_vm2, %v222_v25 }
 0x112   :  { %v221_v29 = vpack.c.bf16 %v167_v26, %v167_v26  ;;  %187 = vst.msk [vmem:[#allocation8] sm:$0xf] %vm186_vm2, %v220_v27 }
 0x113   :  { %190 = vst.msk [vmem:[#allocation8 + $0xc] sm:$0xf] %vm186_vm2, %v223_v28 }
 0x114   :  { %188 = vst.msk [vmem:[#allocation8 + $0x4] sm:$0xf] %vm186_vm2, %v221_v29 }
 0x115   :  { %301 = shalt.err (!%p298_p6)
}
 0x116   :  { %s302_s15 = scalar_lea.hbm %s403_s3, 256 }
 0x117   :  { %p303_p7 = scmp.ne.s32.totalorder %s403_s3, %s302_s15  ;;  %p306_p8 = scmp.lt.u32.totalorder %s302_s15, %s403_s3 }
 0x119   :  { %p308_p9 = pnand %p306_p8, %p303_p7 }
 0x11b   :  { %311 = shalt.err (!%p308_p9)
}
 0x11c   :  { %202 = dma.vmem_to_hbm [thread:$0]  %s197_s12, 256, %s403_s3, [#allocation5], %s319_s22, %s319_s22, %s320_s23  }
 0x11d   :  { %316 = dma.done.wait [#allocation5], 256  }
 0x11e   :  { %317 = vsyncadd [#allocation5], 4294967040 }
 0x11f   :  { %206 = vsyncpa [#allocation4], 1 }
 0x120   :  { %207 = vsyncpa [#allocation7], 1 }
 0x121   :  { %208 = vsyncpa [#allocation5], 1 }

</bundles_post_ra>
